<compile_context>
chip_gen: v7x
topology: tpu7x:2x2x1
jax: 0.10.0
libtpu: 0.0.40
codegen_flags: <defaults>
</compile_context>

<pallas_src>
import functools

import jax
import jax.numpy as jnp
from jax.experimental import pallas as pl
from jax.experimental.pallas import tpu as pltpu


def _round_up(x, m):
    return (x + m - 1) // m * m


def _ce_kernel(x_ref, t_ref, seg_ref, expand_ref, sel_ref, cls_ref, out_ref,
               *, c, rows_valid, sub_rows, use_roll):
    """One grid step over a (TP, L) tile of lane-packed logits + (TP, K) targets.

    Inner fori_loop walks sub_rows-row chunks of the tile, accumulating into
    small (8, K)/(8, L) f32 carries; the final fused (8, L) slab written is
      [folded lse terms (padded to L lanes)] - [folded picked logits],
    so loss = sum over all outputs (done once by the wrapper).
    """
    i = pl.program_id(0)
    tp, lw = x_ref.shape
    kp = t_ref.shape[1]
    n_sub = tp // sub_rows

    # VMEM-resident constants (constant index_map => fetched once, not per step).
    seg = seg_ref[...]        # (L, K)  1[lane//c == group]
    expand = expand_ref[...]  # (K, L)  1[group == lane//c]
    sel = sel_ref[...]        # (L, K)  1[lane == group*c]   (roll path only)
    cls = cls_ref[...]        # (1, L)  lane % c, as f32

    def chunk(j, carry):
        acc_lse, acc_pick = carry
        r0 = pl.multiple_of(j * sub_rows, sub_rows)
        xf = x_ref[pl.ds(r0, sub_rows), :].astype(jnp.float32)   # (S, L)
        ti = t_ref[pl.ds(r0, sub_rows), :].astype(jnp.int32)     # (S, K)

        if use_roll:
            # Sliding-window max of width c via ceil(log2(c)) cyclic rolls
            # (assumes jnp.roll semantics: shift lw-s brings lane j+s to lane j,
            # so the exact per-group max lands at each group-start lane).
            # Any finite stabilizer keeps the lse algebraically exact; this one
            # also makes it numerically robust per logical row.
            m = xf
            w = 1
            while w < c:
                s = min(w, c - w)
                m = jnp.maximum(m, pltpu.roll(m, shift=lw - s, axis=1))
                w += s
            m_grp = jnp.dot(m, sel, preferred_element_type=jnp.float32)        # (S, K)
            m_lane = jnp.dot(m_grp, expand, preferred_element_type=jnp.float32)  # (S, L)
        else:
            # Fallback when c does not divide 128: whole-row max (exact when
            # kp == 1; otherwise a documented, slightly weaker stabilizer).
            m_grp = jnp.max(xf, axis=-1, keepdims=True)   # (S, 1), broadcasts
            m_lane = m_grp

        e = jnp.exp(xf - m_lane)                                               # (S, L)
        s_grp = jnp.dot(e, seg, preferred_element_type=jnp.float32)            # (S, K)
        lse = m_grp + jnp.log(s_grp)                                           # (S, K)

        # Row / target validity masks (select semantics, never multiplicative,
        # so garbage tail-padding rows cannot leak NaN/Inf).
        row = jax.lax.broadcasted_iota(jnp.int32, (sub_rows, 1), 0) + (i * tp + r0)
        row_ok = row < rows_valid                                              # (S, 1)
        valid = row_ok & (ti >= 0) & (ti < c)                                  # (S, K)

        t_lane = jnp.dot(ti.astype(jnp.float32), expand,
                         preferred_element_type=jnp.float32)                   # (S, L)
        pick = row_ok & (jnp.abs(cls - t_lane) < 0.5)                          # (S, L)

        lse_term = jnp.where(valid, lse, 0.0)                                  # (S, K)
        pick_term = jnp.where(pick, xf, 0.0)                                   # (S, L)

        # Fold the sublane axis down to 8 rows with pure VPU adds (reshape only
        # splits whole (8, lane) vreg rows, so it is free).
        acc_lse = acc_lse + jnp.sum(lse_term.reshape(sub_rows // 8, 8, kp), axis=0)
        acc_pick = acc_pick + jnp.sum(pick_term.reshape(sub_rows // 8, 8, lw), axis=0)
        return acc_lse, acc_pick

    acc0 = (jnp.zeros((8, kp), jnp.float32), jnp.zeros((8, lw), jnp.float32))
    acc_lse, acc_pick = jax.lax.fori_loop(0, n_sub, chunk, acc0)

    # Single fused lane-dense (8, L) store (unmasked full-width vst).
    if kp < lw:
        acc_lse = jnp.concatenate(
            [acc_lse, jnp.zeros((8, lw - kp), jnp.float32)], axis=1)
    out_ref[...] = acc_lse - acc_pick


def cross_entropy_2d(out, target, *, block_bytes=4 * 1024 * 1024, sub_rows=512):
    """Pallas equivalent of CrossEntropy2d.forward(out, target).

    out:    (N, C, H, W) float logits
    target: (N, H, W)    int class indices; labels outside [0, C) are ignored.
    returns scalar float32 loss (sum reduction).
    """
    n, c, h, w = out.shape
    r = n * h * w                        # rows of the buggy .view(-1, c) flatten

    logits = out.reshape(r, c)           # free row-major view (matches torch .view)
    tgt32 = target.reshape(r).astype(jnp.int32)

    if r == 0:
        return jnp.zeros((), jnp.float32)

    # ---- Lane packing: k logical rows per kernel row of L = k*c lanes.
    kmax = max(1, 128 // c) if c <= 128 else 1
    kdiv = 1
    for cand in range(min(kmax, r), 0, -1):
        if r % cand == 0:
            kdiv = cand
            break
    # Prefer a divisor of r (free reshape, no slice/epilogue); only fall back to
    # the ideal kmax + tiny epilogue if the best divisor loses >2x lane density.
    k = kdiv if kdiv * 2 >= kmax else kmax
    lane_w = k * c
    rows_packed = r // k
    rm = rows_packed * k
    rem = r - rm

    # ---- Shrink target dtype (HBM traffic); invalid labels -> -1 before cast.
    if c <= 127:
        tdt = jnp.int8
    elif c <= 32767:
        tdt = jnp.int16
    else:
        tdt = jnp.int32
    if tdt is jnp.int32:
        tgt_small = tgt32
    else:
        tgt_small = jnp.where((tgt32 >= 0) & (tgt32 < c), tgt32, -1).astype(tdt)

    # ---- Pure-JAX epilogue for the (< k) leftover logical rows.
    def _tail_loss():
        xe = logits[rm:].astype(jnp.float32)
        te = tgt32[rm:]
        m = jnp.max(xe, axis=-1, keepdims=True)
        lse = m[:, 0] + jnp.log(jnp.sum(jnp.exp(xe - m), axis=-1))
        picked = jnp.take_along_axis(xe, jnp.clip(te, 0, c - 1)[:, None], axis=-1)[:, 0]
        valid = (te >= 0) & (te < c)
        return jnp.sum(jnp.where(valid, lse - picked, 0.0))

    if rows_packed == 0:
        return _tail_loss()

    x_packed = (logits if rem == 0 else logits[:rm]).reshape(rows_packed, lane_w)
    t_packed = (tgt_small if rem == 0 else tgt_small[:rm]).reshape(rows_packed, k)

    # ---- Loop-invariant constant matrices (kept VMEM-resident by the kernel).
    lane = jnp.arange(lane_w, dtype=jnp.int32)
    grp = jnp.arange(k, dtype=jnp.int32)
    seg = (lane[:, None] // c == grp[None, :]).astype(jnp.float32)       # (L, K)
    expand = (grp[:, None] == lane[None, :] // c).astype(jnp.float32)    # (K, L)
    sel = (lane[:, None] == grp[None, :] * c).astype(jnp.float32)        # (L, K)
    cls = (lane[None, :] % c).astype(jnp.float32)                        # (1, L)

    # ---- Tiling: big DMA blocks, fixed-size compute sub-chunks (multiple of 32
    # rows so int8/int16 target blocks stay sublane-aligned).
    itemsize = jnp.dtype(out.dtype).itemsize
    sub = _round_up(min(sub_rows, _round_up(rows_packed, 32)), 32)
    rows_per_blk = max(1, block_bytes // (lane_w * itemsize))
    tp = max(sub, rows_per_blk // sub * sub)
    tp = min(tp, _round_up(rows_packed, sub))
    nblocks = -(-rows_packed // tp)

    use_roll = (lane_w == 128)   # exact per-group stabilizer path
    # TODO(synk): for C not dividing 128 with k > 1 the stabilizer is the whole
    # packed-row max (documented robustness gap vs. the reference).

    kernel = functools.partial(_ce_kernel, c=c, rows_valid=rows_packed,
                               sub_rows=sub, use_roll=use_roll)

    cost = pl.CostEstimate(
        flops=int(rows_packed) * (8 * lane_w * k + 8 * lane_w),
        transcendentals=int(rows_packed) * (lane_w + k),
        bytes_accessed=int(rows_packed * lane_w * itemsize
                           + rows_packed * k * jnp.dtype(tdt).itemsize
                           + nblocks * 8 * lane_w * 4
                           + 3 * lane_w * k * 4 + lane_w * 4),
    )

    parts = pl.pallas_call(
        kernel,
        out_shape=jax.ShapeDtypeStruct((nblocks * 8, lane_w), jnp.float32),
        grid_spec=pltpu.PrefetchScalarGridSpec(
            num_scalar_prefetch=0,
            grid=(nblocks,),
            in_specs=[
                pl.BlockSpec((tp, lane_w), lambda i: (i, 0)),
                pl.BlockSpec((tp, k), lambda i: (i, 0)),
                pl.BlockSpec((lane_w, k), lambda i: (0, 0)),   # seg (resident)
                pl.BlockSpec((k, lane_w), lambda i: (0, 0)),   # expand (resident)
                pl.BlockSpec((lane_w, k), lambda i: (0, 0)),   # sel (resident)
                pl.BlockSpec((1, lane_w), lambda i: (0, 0)),   # cls (resident)
            ],
            out_specs=pl.BlockSpec((8, lane_w), lambda i: (i, 0)),
        ),
        compiler_params=pltpu.CompilerParams(
            dimension_semantics=("parallel",),
            vmem_limit_bytes=48 * 1024 * 1024,
        ),
        cost_estimate=cost,
    )(x_packed, t_packed, seg, expand, sel, cls)

    loss = jnp.sum(parts)
    if rem:
        loss = loss + _tail_loss()
    return loss


def _reference(out, target):
    """Pure-JAX reference mirroring the PyTorch module's semantics."""
    n, c, h, w = out.shape
    logits = out.reshape(-1, c).astype(jnp.float32)
    t = target.reshape(-1).astype(jnp.int32)
    lse = jax.scipy.special.logsumexp(logits, axis=-1)
    picked = jnp.take_along_axis(logits, jnp.clip(t, 0, c - 1)[:, None], axis=-1)[:, 0]
    valid = (t >= 0) & (t < c)
    return jnp.sum(jnp.where(valid, lse - picked, 0.0))


if __name__ == "__main__":
    key = jax.random.PRNGKey(0)
    k1, k2 = jax.random.split(key)

    N, C, H, W = 2, 4, 16, 16
    out = jax.random.normal(k1, (N, C, H, W), dtype=jnp.float32)
    target = jax.random.randint(k2, (N, H, W), 0, C, dtype=jnp.int32)

    loss = cross_entropy_2d(out, target)
    jax.block_until_ready(loss)

    ref = _reference(out, target)
    assert jnp.allclose(loss, ref, rtol=1e-5, atol=1e-3), (loss, ref)
    print("KERNEL_OK")
</pallas_src>

<mosaic_0001>
module attributes {stable_mosaic.version = 11 : i64} {
  func.func @_ce_kernel(%arg0: i32, %arg1: memref<32x128xf32, #tpu.memory_space<vmem>>, %arg2: memref<32x32xi8, #tpu.memory_space<vmem>>, %arg3: memref<128x32xf32, #tpu.memory_space<vmem>>, %arg4: memref<32x128xf32, #tpu.memory_space<vmem>>, %arg5: memref<128x32xf32, #tpu.memory_space<vmem>>, %arg6: memref<1x128xf32, #tpu.memory_space<vmem>>, %arg7: memref<8x128xf32, #tpu.memory_space<vmem>>) attributes {dimension_semantics = [#tpu.dimension_semantics<parallel>], iteration_bounds = array<i64: 1>, scalar_prefetch = 0 : i64, scratch_operands = 0 : i64, tpu.core_type = #tpu.core_type<tc>, window_params = [{transform_indices = @transform_0, window_bounds = array<i64: 32, 128>}, {transform_indices = @transform_1, window_bounds = array<i64: 32, 32>}, {pipeline_mode = #tpu.pipeline_mode<synchronous>, transform_indices = @transform_2, window_bounds = array<i64: 128, 32>}, {pipeline_mode = #tpu.pipeline_mode<synchronous>, transform_indices = @transform_3, window_bounds = array<i64: 32, 128>}, {pipeline_mode = #tpu.pipeline_mode<synchronous>, transform_indices = @transform_4, window_bounds = array<i64: 128, 32>}, {pipeline_mode = #tpu.pipeline_mode<synchronous>, transform_indices = @transform_5, window_bounds = array<i64: 1, 128>}, {transform_indices = @transform_6, window_bounds = array<i64: 8, 128>}]} {
    %c0 = arith.constant 0 : index
    %c0_0 = arith.constant 0 : index
    %0 = vector.load %arg3[%c0, %c0_0] : memref<128x32xf32, #tpu.memory_space<vmem>>, vector<128x32xf32>
    %c0_1 = arith.constant 0 : index
    %c0_2 = arith.constant 0 : index
    %1 = vector.load %arg4[%c0_1, %c0_2] : memref<32x128xf32, #tpu.memory_space<vmem>>, vector<32x128xf32>
    %c0_3 = arith.constant 0 : index
    %c0_4 = arith.constant 0 : index
    %2 = vector.load %arg5[%c0_3, %c0_4] : memref<128x32xf32, #tpu.memory_space<vmem>>, vector<128x32xf32>
    %c0_5 = arith.constant 0 : index
    %c0_6 = arith.constant 0 : index
    %3 = vector.load %arg6[%c0_5, %c0_6] : memref<1x128xf32, #tpu.memory_space<vmem>>, vector<1x128xf32>
    %cst = arith.constant 0.000000e+00 : f32
    %4 = vector.broadcast %cst : f32 to vector<8x32xf32>
    %cst_7 = arith.constant 0.000000e+00 : f32
    %5 = vector.broadcast %cst_7 : f32 to vector<8x128xf32>
    %c0_i32 = arith.constant 0 : i32
    %c32_i32 = arith.constant 32 : i32
    %6 = arith.muli %c0_i32, %c32_i32 : i32
    %7 = tpu.assume_multiple %6, 32 : i32
    %8 = arith.index_cast %7 : i32 to index
    %c0_8 = arith.constant 0 : index
    %9 = vector.load %arg1[%8, %c0_8] : memref<32x128xf32, #tpu.memory_space<vmem>>, vector<32x128xf32>
    %10 = arith.index_cast %7 : i32 to index
    %c0_9 = arith.constant 0 : index
    %11 = vector.load %arg2[%10, %c0_9] : memref<32x32xi8, #tpu.memory_space<vmem>>, vector<32x32xi8>
    %12 = arith.extsi %11 : vector<32x32xi8> to vector<32x32xi32>
    %c127_i32 = arith.constant 127 : i32
    %13 = tpu.dynamic_rotate %9 by %c127_i32 dim 1 : vector<32x128xf32>, i32 -> vector<32x128xf32>
    %14 = arith.maximumf %9, %13 : vector<32x128xf32>
    %c126_i32 = arith.constant 126 : i32
    %15 = tpu.dynamic_rotate %14 by %c126_i32 dim 1 : vector<32x128xf32>, i32 -> vector<32x128xf32>
    %16 = arith.maximumf %14, %15 : vector<32x128xf32>
    %cst_10 = arith.constant dense<0.000000e+00> : vector<32x32xf32>
    %17 = tpu.matmul %16, %2, %cst_10 {dimension_numbers = #tpu.dot_dimension_numbers<[1], [0], [0], [1], [0, 0, 1, 1], [], []>} : vector<32x128xf32>, vector<128x32xf32>, vector<32x32xf32> -> vector<32x32xf32>
    %cst_11 = arith.constant dense<0.000000e+00> : vector<32x128xf32>
    %18 = tpu.matmul %17, %1, %cst_11 {dimension_numbers = #tpu.dot_dimension_numbers<[1], [0], [0], [1], [0, 0, 1, 1], [], []>} : vector<32x32xf32>, vector<32x128xf32>, vector<32x128xf32> -> vector<32x128xf32>
    %19 = arith.subf %9, %18 : vector<32x128xf32>
    %20 = math.exp %19 : vector<32x128xf32>
    %cst_12 = arith.constant dense<0.000000e+00> : vector<32x32xf32>
    %21 = tpu.matmul %20, %0, %cst_12 {dimension_numbers = #tpu.dot_dimension_numbers<[1], [0], [0], [1], [0, 0, 1, 1], [], []>} : vector<32x128xf32>, vector<128x32xf32>, vector<32x32xf32> -> vector<32x32xf32>
    %22 = math.log %21 : vector<32x32xf32>
    %23 = arith.addf %17, %22 : vector<32x32xf32>
    %24 = tpu.iota {dimensions = array<i32: 0>} : vector<32x1xi32>
    %c32_i32_13 = arith.constant 32 : i32
    %25 = arith.muli %arg0, %c32_i32_13 : i32
    %26 = arith.addi %25, %7 : i32
    %27 = vector.broadcast %26 : i32 to vector<32x1xi32>
    %28 = arith.addi %24, %27 : vector<32x1xi32>
    %c16_i32 = arith.constant 16 : i32
    %29 = vector.broadcast %c16_i32 : i32 to vector<32x1xi32>
    %30 = arith.cmpi slt, %28, %29 : vector<32x1xi32>
    %c0_i32_14 = arith.constant 0 : i32
    %31 = vector.broadcast %c0_i32_14 : i32 to vector<32x32xi32>
    %32 = arith.cmpi sge, %12, %31 : vector<32x32xi32>
    %33 = vector.broadcast %30 : vector<32x1xi1> to vector<32x32xi1>
    %34 = arith.andi %33, %32 : vector<32x32xi1>
    %c4_i32 = arith.constant 4 : i32
    %35 = vector.broadcast %c4_i32 : i32 to vector<32x32xi32>
    %36 = arith.cmpi slt, %12, %35 : vector<32x32xi32>
    %37 = arith.andi %34, %36 : vector<32x32xi1>
    %38 = arith.sitofp %12 : vector<32x32xi32> to vector<32x32xf32>
    %cst_15 = arith.constant dense<0.000000e+00> : vector<32x128xf32>
    %39 = tpu.matmul %38, %1, %cst_15 {dimension_numbers = #tpu.dot_dimension_numbers<[1], [0], [0], [1], [0, 0, 1, 1], [], []>} : vector<32x32xf32>, vector<32x128xf32>, vector<32x128xf32> -> vector<32x128xf32>
    %40 = vector.broadcast %3 : vector<1x128xf32> to vector<32x128xf32>
    %41 = arith.subf %40, %39 : vector<32x128xf32>
    %42 = math.absf %41 : vector<32x128xf32>
    %cst_16 = arith.constant 5.000000e-01 : f32
    %43 = vector.broadcast %cst_16 : f32 to vector<32x128xf32>
    %44 = arith.cmpf olt, %42, %43 : vector<32x128xf32>
    %45 = vector.broadcast %30 : vector<32x1xi1> to vector<32x128xi1>
    %46 = arith.andi %45, %44 : vector<32x128xi1>
    %cst_17 = arith.constant 0.000000e+00 : f32
    %47 = vector.broadcast %cst_17 : f32 to vector<32x32xf32>
    %48 = arith.select %37, %23, %47 : vector<32x32xi1>, vector<32x32xf32>
    %cst_18 = arith.constant 0.000000e+00 : f32
    %49 = vector.broadcast %cst_18 : f32 to vector<32x128xf32>
    %50 = arith.select %46, %9, %49 : vector<32x128xi1>, vector<32x128xf32>
    %51 = vector.shape_cast %48 : vector<32x32xf32> to vector<4x8x32xf32>
    %cst_19 = arith.constant dense<0.000000e+00> : vector<8x32xf32>
    %52 = vector.multi_reduction <add>, %51, %cst_19 [0] : vector<4x8x32xf32> to vector<8x32xf32>
    %53 = arith.addf %4, %52 : vector<8x32xf32>
    %54 = vector.shape_cast %50 : vector<32x128xf32> to vector<4x8x128xf32>
    %cst_20 = arith.constant dense<0.000000e+00> : vector<8x128xf32>
    %55 = vector.multi_reduction <add>, %54, %cst_20 [0] : vector<4x8x128xf32> to vector<8x128xf32>
    %56 = arith.addf %5, %55 : vector<8x128xf32>
    %c1_i32 = arith.constant 1 : i32
    %cst_21 = arith.constant 0.000000e+00 : f32
    %57 = vector.broadcast %cst_21 : f32 to vector<8x96xf32>
    %58 = tpu.concatenate %53, %57 in 1 : vector<8x32xf32>, vector<8x96xf32> -> vector<8x128xf32>
    %59 = arith.subf %58, %56 : vector<8x128xf32>
    %c0_22 = arith.constant 0 : index
    %c0_23 = arith.constant 0 : index
    %60 = vector.load %arg7[%c0_22, %c0_23] : memref<8x128xf32, #tpu.memory_space<vmem>>, vector<8x128xf32>
    tpu.vector_store %arg7[%c0_22, %c0_23], %59 {strides = array<i32>} : memref<8x128xf32, #tpu.memory_space<vmem>>, vector<8x128xf32>,
    return
  }
  func.func @transform_0(%arg0: i32) -> (i32, i32) {
    %c0_i32 = arith.constant 0 : i32
    %c0_i32_0 = arith.constant 0 : i32
    return %arg0, %c0_i32 : i32, i32
  }
  func.func @transform_1(%arg0: i32) -> (i32, i32) {
    %c0_i32 = arith.constant 0 : i32
    %c0_i32_0 = arith.constant 0 : i32
    return %arg0, %c0_i32 : i32, i32
  }
  func.func @transform_2(%arg0: i32) -> (i32, i32) {
    %c0_i32 = arith.constant 0 : i32
    %c0_i32_0 = arith.constant 0 : i32
    %c0_i32_1 = arith.constant 0 : i32
    return %c0_i32, %c0_i32_0 : i32, i32
  }
  func.func @transform_3(%arg0: i32) -> (i32, i32) {
    %c0_i32 = arith.constant 0 : i32
    %c0_i32_0 = arith.constant 0 : i32
    %c0_i32_1 = arith.constant 0 : i32
    return %c0_i32, %c0_i32_0 : i32, i32
  }
  func.func @transform_4(%arg0: i32) -> (i32, i32) {
    %c0_i32 = arith.constant 0 : i32
    %c0_i32_0 = arith.constant 0 : i32
    %c0_i32_1 = arith.constant 0 : i32
    return %c0_i32, %c0_i32_0 : i32, i32
  }
  func.func @transform_5(%arg0: i32) -> (i32, i32) {
    %c0_i32 = arith.constant 0 : i32
    %c0_i32_0 = arith.constant 0 : i32
    %c0_i32_1 = arith.constant 0 : i32
    return %c0_i32, %c0_i32_0 : i32, i32
  }
  func.func @transform_6(%arg0: i32) -> (i32, i32) {
    %c0_i32 = arith.constant 0 : i32
    %c0_i32_0 = arith.constant 0 : i32
    return %arg0, %c0_i32 : i32, i32
  }
}

</mosaic_0001>

<bundles_post_ra>
// kernel: tpu_custom_call.1
= control target key start
LH: loop header
LB: loop body
LE: loop exit
PB: predicated region body
PF: predicated region fallthrough
CT: control target
= control target key end

     0   :  { %s906_s13 = smov 127   ;;  %s1133_s0 = inlined_call_operand.vmem [shape: f32[16,128], index: 0, kind: input, shape index: {}]   ;;  %s1134_s1 = inlined_call_operand.vmem [shape: s8[16,32], index: 1, kind: input, shape index: {}]   ;;  %s1135_s2 = inlined_call_operand.vmem [shape: f32[128,32], index: 2, kind: input, shape index: {}]   ;;  %s1136_s3 = inlined_call_operand.vmem [shape: f32[32,128], index: 3, kind: input, shape index: {}]   ;;  %s1137_s4 = inlined_call_operand.vmem [shape: f32[128,32], index: 4, kind: input, shape index: {}]   ;;  %s1138_s5 = inlined_call_operand.vmem [shape: f32[1,128], index: 5, kind: input, shape index: {}]   ;;  %s1139_s6 = inlined_call_operand.hbm [shape: f32[8,128], index: 6, kind: output, shape index: {}]  }
   0x1   :  { %v947_v0 = vld [vmem:[%s1133_s0] sm:$0xff]  ;;  %v952_v1 = vld [vmem:[%s1133_s0 + $0x8] sm:$0xff]  ;;  %v957_v2 = vld [vmem:[%s1133_s0 + $0x10] sm:$0xff] }
   0x2   :  { %v850_v3 = vpack.i.bf16 %v952_v1, %v947_v0  ;;  %v964_v4 = vld [vmem:[%s1133_s0 + $0x18] sm:$0xff]  ;;  %v44_v5 = vld [vmem:[%s1137_s4] sm:$0xff]  ;;  %v45_v6 = vld [vmem:[%s1137_s4 + $0x8] sm:$0xff] }
   0x3   :  { %v766_v7 = vpack.c.bf16 %v45_v6, %v44_v5  ;;  %v46_v8 = vld [vmem:[%s1137_s4 + $0x10] sm:$0xff]  ;;  %v47_v9 = vld [vmem:[%s1137_s4 + $0x18] sm:$0xff]  ;;  %v855_v10 = vpack.i.bf16 %v964_v4, %v957_v2  ;;  %v48_v12 = vld [vmem:[%s1137_s4 + $0x20] sm:$0xff] }
   0x4   :  { %851 = vrot.lane.b32.xlu0 %v850_v3, %s906_s13  ;;  %v770_v11 = vpack.c.bf16 %v47_v9, %v46_v8  ;;  %v49_v13 = vld [vmem:[%s1137_s4 + $0x28] sm:$0xff] }
   0x5   :  { %767 = vmatprep.subr.bf16.mxu0 %v766_v7  ;;  %v774_v14 = vpack.c.bf16 %v49_v13, %v48_v12 }
   0x6   :  { %769 = vmatpush3.bf16.msra.mxu0 %v766_v7 }
   0x7   :  { %771 = vmatprep.subr.bf16.mxu0 %v770_v11 }
   0x8   :  { %11 = vsyncpa [#allocation3], 0  ;;  %856 = vrot.lane.b32.xlu0 %v855_v10, %s906_s13  ;;  %v50_v15 = vld [vmem:[%s1137_s4 + $0x30] sm:$0xff]  ;;  %v51_v16 = vld [vmem:[%s1137_s4 + $0x38] sm:$0xff]  ;;  %s907_s19 = smov 126   ;;  %vm182_vm0 = vcmask 261120  }
   0x9   :  { %v778_v17 = vpack.c.bf16 %v51_v16, %v50_v15  ;;  %v52_v18 = vld [vmem:[%s1137_s4 + $0x40] sm:$0xff]  ;;  %v53_v19 = vld [vmem:[%s1137_s4 + $0x48] sm:$0xff]  ;;  %v54_v21 = vld [vmem:[%s1137_s4 + $0x50] sm:$0xff] }
   0xa   :  { %773 = vmatpush3.bf16.msra.mxu0 %v770_v11  ;;  %v782_v20 = vpack.c.bf16 %v53_v19, %v52_v18  ;;  %v55_v22 = vld [vmem:[%s1137_s4 + $0x58] sm:$0xff]  ;;  %v56_v24 = vld [vmem:[%s1137_s4 + $0x60] sm:$0xff]  ;;  %v57_v25 = vld [vmem:[%s1137_s4 + $0x68] sm:$0xff] }
   0xb   :  { %775 = vmatprep.subr.bf16.mxu0 %v774_v14  ;;  %v786_v23 = vpack.c.bf16 %v55_v22, %v54_v21  ;;  %v790_v26 = vpack.c.bf16 %v57_v25, %v56_v24  ;;  %v58_v27 = vld [vmem:[%s1137_s4 + $0x70] sm:$0xff]  ;;  %v59_v28 = vld [vmem:[%s1137_s4 + $0x78] sm:$0xff]  ;;  %v40_v35 = vld [vmem:[%s1136_s3] sm:$0xff] }
   0xc   :  { %v794_v29 = vpack.c.bf16 %v59_v28, %v58_v27  ;;  %v41_v36 = vld [vmem:[%s1136_s3 + $0x8] sm:$0xff]  ;;  %v42_v37 = vld [vmem:[%s1136_s3 + $0x10] sm:$0xff]  ;;  %v43_v40 = vld [vmem:[%s1136_s3 + $0x18] sm:$0xff] }
   0xd   :  { %v798_v39 = vpack.c.bf16 %v41_v36, %v40_v35  ;;  %v802_v44 = vpack.c.bf16 %v43_v40, %v42_v37  ;;  %v24_v58 = vld [vmem:[%s1135_s2] sm:$0xff]  ;;  %v25_v59 = vld [vmem:[%s1135_s2 + $0x8] sm:$0xff]  ;;  %v26_v61 = vld [vmem:[%s1135_s2 + $0x10] sm:$0xff] }
   0xe   :  { %777 = vmatpush3.bf16.msra.mxu0 %v774_v14  ;;  %v806_v60 = vpack.c.bf16 %v25_v59, %v24_v58  ;;  %v27_v62 = vld [vmem:[%s1135_s2 + $0x18] sm:$0xff]  ;;  %v28_v6 = vld [vmem:[%s1135_s2 + $0x20] sm:$0xff]  ;;  %v29_v7 = vld [vmem:[%s1135_s2 + $0x28] sm:$0xff] }
   0xf   :  { %779 = vmatprep.subr.bf16.mxu0 %v778_v17  ;;  %799 = vmatprep.subr.bf16.mxu1 %v798_v39  ;;  %v810_v5 = vpack.c.bf16 %v27_v62, %v26_v61  ;;  %v814_v10 = vpack.c.bf16 %v29_v7, %v28_v6  ;;  %v30_v11 = vld [vmem:[%s1135_s2 + $0x30] sm:$0xff]  ;;  %v31_v12 = vld [vmem:[%s1135_s2 + $0x38] sm:$0xff]  ;;  %v32_v14 = vld [vmem:[%s1135_s2 + $0x40] sm:$0xff] }
  0x10   :  { %801 = vmatpush3.bf16.msra.mxu1 %v798_v39  ;;  %v818_v13 = vpack.c.bf16 %v31_v12, %v30_v11  ;;  %v33_v15 = vld [vmem:[%s1135_s2 + $0x48] sm:$0xff]  ;;  %v35_v18 = vld [vmem:[%s1135_s2 + $0x58] sm:$0xff] }
  0x11   :  { %803 = vmatprep.subr.bf16.mxu1 %v802_v44  ;;  %v822_v16 = vpack.c.bf16 %v33_v15, %v32_v14  ;;  %v37_v21 = vld [vmem:[%s1135_s2 + $0x68] sm:$0xff]  ;;  %v39_v24 = vld [vmem:[%s1135_s2 + $0x78] sm:$0xff] }
  0x12   :  { %781 = vmatpush3.bf16.msra.mxu0 %v778_v17  ;;  %v34_v17 = vld [vmem:[%s1135_s2 + $0x50] sm:$0xff] }
  0x13   :  { %783 = vmatprep.subr.bf16.mxu0 %v782_v20  ;;  %v826_v19 = vpack.c.bf16 %v35_v18, %v34_v17 }
  0x14   :  { %805 = vmatpush3.bf16.msra.mxu1 %v802_v44 }
  0x15   :  { %807 = vmatprep.subr.bf16.mxu1 %v806_v60 }
  0x16   :  { %785 = vmatpush3.bf16.msra.mxu0 %v782_v20  ;;  %v36_v20 = vld [vmem:[%s1135_s2 + $0x60] sm:$0xff] }
  0x17   :  { %787 = vmatprep.subr.bf16.mxu0 %v786_v23  ;;  %v830_v22 = vpack.c.bf16 %v37_v21, %v36_v20 }
  0x1a   :  { %789 = vmatpush3.bf16.msra.mxu0 %v786_v23  ;;  %v38_v23 = vld [vmem:[%s1135_s2 + $0x70] sm:$0xff] }
  0x1b   :  { %791 = vmatprep.subr.bf16.mxu0 %v790_v26  ;;  %v834_v25 = vpack.c.bf16 %v39_v24, %v38_v23 }
  0x1e   :  { %793 = vmatpush3.bf16.msra.mxu0 %v790_v26  ;;  %v599_v26 = vld [vmem:[%s1134_s1] sm:$0xff]  }
  0x1f   :  { %795 = vmatprep.subr.bf16.mxu0 %v794_v29  ;;  %v1093_v27 = vunpack.c.0.s8 %v599_v26  ;;  %v1095_v28 = vunpack.c.1.s8 %v599_v26 }
  0x21   :  { %vm406_vm3 = vcmp.ge.s32.totalorder %v1095_v28, 0  ;;  %vm422_vm4 = vcmp.lt.s32.totalorder %v1095_v28, 4  ;;  %vm405_vm5 = vcmp.ge.s32.totalorder %v1093_v27, 0  ;;  %vm421_vm6 = vcmp.lt.s32.totalorder %v1093_v27, 4 }
  0x22   :  { %797 = vmatpush3.bf16.msra.mxu0 %v794_v29  ;;  %v604_v29 = vunpack.c.2.s8 %v599_v26  ;;  %vm426_vm7 = vmand %vm406_vm3, %vm422_vm4 }
  0x23   :  { %839 = vmatprep.subr.bf16.mxu0 %v798_v39  ;;  %vm425_vm8 = vmand %vm405_vm5, %vm421_vm6 }
  0x76   :  { %v852_v30 = vpop.permute.xlu0 %851 }
  0x77   :  { %v854_v31 = vunpack.i.h.bf16 %v852_v30  ;;  %v853_v32 = vunpack.i.l.bf16 %v852_v30  ;;  %v605_v30 = vunpack.c.3.s8 %v599_v26 }
  0x79   :  { %v81_v33 = vmax.f32 %v947_v0, %v853_v32  ;;  %v82_v34 = vmax.f32 %v952_v1, %v854_v31  ;;  %v429_v31 = vcvt.s32.f32 %v1093_v27  ;;  %v430_v32 = vcvt.s32.f32 %v1095_v28 }
  0x7a   :  { %v857_v38 = vpop.permute.xlu0 %856 }
  0x7b   :  { %v859_v41 = vunpack.i.h.bf16 %v857_v38  ;;  %v858_v42 = vunpack.i.l.bf16 %v857_v38  ;;  %v860_v43 = vpack.i.bf16 %v82_v34, %v81_v33 }
  0x7d   :  { %v84_v45 = vmax.f32 %v964_v4, %v859_v41  ;;  %v83_v46 = vmax.f32 %v957_v2, %v858_v42  ;;  %861 = vrot.lane.b32.xlu1 %v860_v43, %s907_s19 }
  0x7f   :  { %v865_v47 = vpack.i.bf16 %v84_v45, %v83_v46 }
  0x81   :  { %866 = vrot.lane.b32.xlu1 %v865_v47, %s907_s19 }
  0xef   :  { %v862_v48 = vpop.permute.xlu1 %861 }
  0xf0   :  { %v864_v49 = vunpack.i.h.bf16 %v862_v48  ;;  %v863_v50 = vunpack.i.l.bf16 %v862_v48 }
  0xf2   :  { %v94_v51 = vmax.f32 %v82_v34, %v864_v49  ;;  %v93_v52 = vmax.f32 %v81_v33, %v863_v50  ;;  %v431_v33 = vcvt.s32.f32 %v604_v29  ;;  %v432_v34 = vcvt.s32.f32 %v605_v30 }
  0xf3   :  { %v867_v53 = vpop.permute.xlu1 %866 }
  0xf4   :  { %v869_v54 = vunpack.i.h.bf16 %v867_v53  ;;  %v868_v55 = vunpack.i.l.bf16 %v867_v53  ;;  %694 = vmatprep.mubr.f32.mxu0 %v93_v52 }
  0xf5   :  { %695 = vmatmul.mubr.f32.vlgmr.msra.gmra.mrb[0].mxu0 %v94_v51 }
  0xf6   :  { %v96_v56 = vmax.f32 %v84_v45, %v869_v54  ;;  %v95_v57 = vmax.f32 %v83_v46, %v868_v55  ;;  %841 = vmatpush3.bf16.msra.mxu0 %v798_v39 }
  0xf7   :  { %843 = vmatprep.subr.bf16.mxu0 %v802_v44 }
  0xf8   :  { %697 = vmatprep.mubr.f32.mxu0 %v95_v57 }
  0xf9   :  { %698 = vmatmul.mubr.f32.gmra.mrb[2].mxu0 %v96_v56 }
  0xfa   :  { %845 = vmatpush3.bf16.msra.mxu0 %v802_v44  ;;  %760 = vmatprep.mubr.msk.f32.mxu0 %vm182_vm0, %v429_v31 }
  0xfd   :  { %761 = vmatmul.mubr.msk.f32.vlgmr.msra.gmra.mrb[4].mxu0 %vm182_vm0, %v430_v32 }
  0xfe   :  { %763 = vmatprep.mubr.msk.f32.mxu0 %vm182_vm0, %v431_v33 }
 0x101   :  { %764 = vmatmul.mubr.msk.f32.gmra.mrb[6].mxu0 %vm182_vm0, %v432_v34 }
 0x1c8   :  { %v1044_v63 = vpop.f32.mrb[0].mxu0 }
 0x1c9   :  { %v1046_v3 = vpop.f32.mrb[1].mxu0 }
 0x1ca   :  { %708 = vmatprep.mubr.msk.f32.mxu1 %vm182_vm0, %v1046_v3 }
 0x1cb   :  { %709 = vmatmul.mubr.msk.f32.vlgmr.msra.gmra.mrb[0].mxu1 %vm182_vm0, %v1044_v63 }
 0x1cc   :  { %v699_v8 = vpop.f32.mrb[2].mxu0  ;;  %809 = vmatpush3.bf16.msra.mxu1 %v806_v60 }
 0x1cd   :  { %v173_v9 = vpop.f32.mrb[3].mxu0  ;;  %811 = vmatprep.subr.bf16.mxu1 %v810_v5 }
 0x1ce   :  { %711 = vmatprep.mubr.msk.f32.mxu1 %vm182_vm0, %v173_v9 }
 0x1cf   :  { %712 = vmatmul.mubr.msk.f32.gmra.mrb[2].mxu1 %vm182_vm0, %v699_v8 }
 0x1d0   :  { %813 = vmatpush3.bf16.msra.mxu1 %v810_v5  ;;  %v762_v51 = vpop.f32.mrb[4].mxu0 }
 0x1d1   :  { %815 = vmatprep.subr.bf16.mxu1 %v814_v10  ;;  %v511_v52 = vpop.f32.mrb[5].mxu0 }
 0x1d4   :  { %817 = vmatpush3.bf16.msra.mxu1 %v814_v10  ;;  %v765_v54 = vpop.f32.mrb[6].mxu0 }
 0x1d5   :  { %819 = vmatprep.subr.bf16.mxu1 %v818_v13  ;;  %v521_v57 = vpop.f32.mrb[7].mxu0 }
 0x1d8   :  { %821 = vmatpush3.bf16.msra.mxu1 %v818_v13 }
 0x1d9   :  { %823 = vmatprep.subr.bf16.mxu1 %v822_v16 }
 0x1dc   :  { %825 = vmatpush3.bf16.msra.mxu1 %v822_v16 }
 0x1dd   :  { %827 = vmatprep.subr.bf16.mxu1 %v826_v19 }
 0x1e0   :  { %829 = vmatpush3.bf16.msra.mxu1 %v826_v19 }
 0x1e1   :  { %831 = vmatprep.subr.bf16.mxu1 %v830_v22 }
 0x1e4   :  { %833 = vmatpush3.bf16.msra.mxu1 %v830_v22 }
 0x1e5   :  { %835 = vmatprep.subr.bf16.mxu1 %v834_v25 }
 0x1e8   :  { %837 = vmatpush3.bf16.msra.mxu1 %v834_v25 }
 0x29e   :  { %v710_v35 = vpop.f32.mrb[0].mxu1 }
 0x29f   :  { %v281_v36 = vsub.f32 %v952_v1, %v710_v35  ;;  %v261_v37 = vpop.f32.mrb[1].mxu1 }
 0x2a0   :  { %v280_v38 = vsub.f32 %v947_v0, %v261_v37 }
 0x2a1   :  { %v286_v39 = vmul.f32 1.442695, %v281_v36 }
 0x2a2   :  { %v284_v40 = vmul.f32 1.442695, %v280_v38  ;;  %v713_v41 = vpop.f32.mrb[2].mxu1 }
 0x2a3   :  { %v283_v42 = vsub.f32 %v964_v4, %v713_v41  ;;  %v271_v43 = vpop.f32.mrb[3].mxu1  ;;  %v597_v4 = vld [vmem:[%s1138_s5] ss:$0 sm:$0xff]  ;;  %s908_s5 = smov [#allocation2]  }
 0x2a4   :  { %870 = vpow2.f32 %v284_v40  ;;  %v282_v44 = vsub.f32 %v957_v2, %v271_v43  ;;  %v537_v2 = vsub.f32 %v597_v4, %v762_v51  ;;  %v536_v53 = vsub.f32 %v597_v4, %v511_v52  ;;  %s581_s26 = sshll.u32 %s908_s5, 4  ;;  %s582_s26 = int_to_ptr.vmem [resolvable:$true] %s581_s26 }
 0x2a5   :  { %872 = vpow2.f32 %v286_v39  ;;  %v290_v45 = vmul.f32 1.442695, %v283_v42  ;;  %s882_s27 = scalar_lea.vmem %s582_s26, 128  ;;  %p887_p1 = scmp.lt.s32.totalorder %s582_s26, %s582_s26 }
 0x2a6   :  { %v288_v46 = vmul.f32 1.442695, %v282_v44  ;;  %v541_v55 = vand.u32 2147483647, %v537_v2  ;;  %v540_v56 = vand.u32 2147483647, %v536_v53  ;;  %p883_p0 = scmp.ne.s32.totalorder %s582_s26, %s882_s27  ;;  %p888_p2 = scmp.lt.s32.totalorder %s882_s27, %s882_s27 }
 0x2a8   :  { %874 = vpow2.f32 %v288_v46  ;;  %vm545_vm1 = vcmp.lt.f32.partialorder %v541_v55, 0.5  ;;  %vm544_vm2 = vcmp.lt.f32.partialorder %v540_v56, 0.5  ;;  %p889_p3 = por %p888_p2, %p887_p1 }
 0x2a9   :  { %876 = vpow2.f32 %v290_v45  ;;  %v557_v58 = vsel %vm545_vm1, %v952_v1, 0.0  ;;  %v556_v59 = vsel %vm544_vm2, %v947_v0, 0.0 }
 0x2aa   :  { %v568_v60 = vadd.f32 %v557_v58, %v556_v59  ;;  %p890_p4 = pnand %p889_p3, %p883_p0 }
 0x2ae   :  { %v871_v47 = vpop.eup %870 }
 0x2af   :  { %v873_v48 = vpop.eup %872  ;;  %746 = vmatprep.mubr.f32.mxu1 %v871_v47 }
 0x2b0   :  { %747 = vmatmul.mubr.f32.vlgmr.msra.gmra.mrb[4].mxu1 %v873_v48 }
 0x2b2   :  { %v875_v49 = vpop.eup %874 }
 0x2b3   :  { %v877_v50 = vpop.eup %876  ;;  %749 = vmatprep.mubr.f32.mxu1 %v875_v49 }
 0x2b4   :  { %750 = vmatmul.mubr.f32.gmra.mrb[6].mxu1 %v877_v50 }
 0x383   :  { %v748_v61 = vpop.f32.mrb[4].mxu1 }
 0x384   :  { %878 = vlog2.f32 %v748_v61  ;;  %v358_v62 = vpop.f32.mrb[5].mxu1 }
 0x385   :  { %880 = vlog2.f32 %v358_v62 }
 0x387   :  { %v751_v5 = vpop.f32.mrb[6].mxu1 }
 0x388   :  { %v368_v6 = vpop.f32.mrb[7].mxu1 }
 0x38e   :  { %v879_v7 = vpop.eup %878 }
 0x38f   :  { %v881_v8 = vpop.eup %880  ;;  %v380_v1 = vmul.f32 0.6931472, %v879_v7 }
 0x390   :  { %v378_v9 = vmul.f32 0.6931472, %v881_v8 }
 0x391   :  { %v386_v0 = vadd.f32 %v1044_v63, %v380_v1 }
 0x392   :  { %v385_v10 = vadd.f32 %v378_v9, %v1046_v3 }
 0x393   :  { %v553_v11 = vsel %vm426_vm7, %v386_v0, 0.0 }
 0x394   :  { %v552_v12 = vsel %vm425_vm8, %v385_v10, 0.0  ;;  %v561_v13 = vsel %vm182_vm0, %v553_v11, 0.0 }
 0x395   :  { %v560_v14 = vsel %vm182_vm0, %v552_v12, 0.0 }
 0x396   :  { %v562_v15 = vadd.f32 %v561_v13, %v560_v14 }
 0x398   :  { %v572_v16 = vsel %vm182_vm0, %v562_v15, 0.0 }
 0x399   :  { %v573_v17 = vsub.f32 %v572_v16, %v568_v60 }
 0x39b   :  { %574 = vst [vmem:[#allocation2] sm:$0xff] %v573_v17 }
 0x39c   :  { %893 = shalt.err (!%p890_p4)
}
 0x39d   :  { %s894_s30 = scalar_lea.hbm %s1139_s6, 128 }
 0x39e   :  { %p895_p5 = scmp.ne.s32.totalorder %s1139_s6, %s894_s30  ;;  %p898_p6 = scmp.lt.u32.totalorder %s894_s30, %s1139_s6 }
 0x3a0   :  { %p900_p7 = pnand %p898_p6, %p895_p5 }
 0x3a2   :  { %903 = shalt.err (!%p900_p7)
}
 0x3a3   :  { %584 = dma.vmem_to_hbm [thread:$0]  %s582_s26, 128, %s1139_s6, [#allocation3]  }
 0x3a4   :  { %904 = dma.done.wait [#allocation3], 128  }
 0x3a5   :  { %905 = vsyncadd [#allocation3], 4294967168 }
 0x3a6   :  { %588 = vsyncpa [#allocation3], 1 }

</bundles_post_ra>
